<compile_context>
chip_gen: v7x
topology: tpu7x:2x2x1
jax: 0.10.0
libtpu: 0.0.40
codegen_flags: <defaults>
</compile_context>

<pallas_src>
import jax
import jax.numpy as jnp
from jax.experimental import pallas as pl
from jax.experimental.pallas import tpu as pltpu


def _round_up(n, m):
    return ((n + m - 1) // m) * m


def features_linear_kernel(x_ref, w_ref, b_ref, o_ref):
    # x_ref: (TB, K) VMEM, w_ref: (K, 1) VMEM, b_ref: (1, 1) SMEM, o_ref: (TB, 1) VMEM
    o_ref[...] = (
        jnp.dot(x_ref[...], w_ref[...], preferred_element_type=jnp.float32)
        + b_ref[0, 0]
    )


def features_linear(x, weight, bias, *, block_b=1024,
                    vmem_budget_bytes=8 * 1024 * 1024):
    """x: (B, F, D); weight: (1, D); bias: (1,) -> (B, 1) f32."""
    B, F, D = x.shape
    K = F * D

    compute_dtype = x.dtype if x.dtype == jnp.bfloat16 else jnp.float32
    itemsize = jnp.dtype(compute_dtype).itemsize

    # Lane-dense layout: flatten the (F, D) trailing dims (contiguous -> free).
    x2d = x.reshape(B, K).astype(compute_dtype)

    # Effective weight for the flattened axis: w repeated over fields, as a
    # (K, 1) column so the kernel does a single fused MXU contraction.
    w_col = (
        jnp.tile(weight.reshape(1, D).astype(compute_dtype), (F, 1)).reshape(K, 1)
    )
    bias_2d = bias.reshape(1, 1).astype(jnp.float32)

    # Batch tile: as large as reasonable (pipelining efficiency), aligned to the
    # sublane packing of the compute dtype (8 for f32, 16 for bf16), and capped
    # so the double-buffered x tile fits well inside scoped VMEM.
    align = 16 if itemsize == 2 else 8
    max_tb_vmem = max(align,
                      (vmem_budget_bytes // (2 * K * itemsize)) // align * align)
    tb = min(block_b, max_tb_vmem, _round_up(B, align))
    grid_b = pl.cdiv(B, tb)
    b_pad = grid_b * tb
    if b_pad != B:
        x2d = jnp.pad(x2d, ((0, b_pad - B), (0, 0)))

    out = pl.pallas_call(
        features_linear_kernel,
        out_shape=jax.ShapeDtypeStruct((b_pad, 1), jnp.float32),
        grid=(grid_b,),
        in_specs=[
            pl.BlockSpec((tb, K), lambda i: (i, 0)),            # batch-tiled x
            pl.BlockSpec((K, 1), lambda i: (0, 0)),             # weight, resident
            pl.BlockSpec(memory_space=pltpu.MemorySpace.SMEM),  # scalar bias
        ],
        out_specs=pl.BlockSpec((tb, 1), lambda i: (i, 0)),
        compiler_params=pltpu.CompilerParams(
            dimension_semantics=("parallel",),  # shard batch grid across TCs (v7x)
        ),
    )(x2d, w_col, bias_2d)

    return out[:B]


if __name__ == "__main__":
    # Small shapes consistent with the module: batch=2, num_fields=8, embed_dims=32
    B, F, D = 2, 8, 32
    key = jax.random.PRNGKey(0)
    kx, kw = jax.random.split(key)

    x = jax.random.normal(kx, (B, F, D), dtype=jnp.float32)

    # nn.Linear(D, 1, bias=False) default init: U(-1/sqrt(D), 1/sqrt(D)), shape (1, D)
    bound = 1.0 / (D ** 0.5)
    weight = jax.random.uniform(kw, (1, D), minval=-bound, maxval=bound,
                                dtype=jnp.float32)
    # module's own bias parameter, initialized to zeros((1,))
    bias = jnp.zeros((1,), dtype=jnp.float32)

    out = features_linear(x, weight, bias)
    jax.block_until_ready(out)

    # Reference check in plain JAX (same math as the PyTorch forward).
    ref = jnp.sum(x @ weight.T, axis=1) + bias  # (B, 1)
    assert out.shape == (B, 1)
    assert jnp.allclose(out, ref, atol=1e-5, rtol=1e-5)

    print("KERNEL_OK")
</pallas_src>

<mosaic_0001>
module attributes {stable_mosaic.version = 11 : i64} {
  func.func @features_linear_kernel(%arg0: i32, %arg1: memref<8x256xf32, #tpu.memory_space<vmem>>, %arg2: memref<256x1xf32, #tpu.memory_space<vmem>>, %arg3: memref<1x1xf32, #tpu.memory_space<smem>>, %arg4: memref<8x1xf32, #tpu.memory_space<vmem>>) attributes {dimension_semantics = [#tpu.dimension_semantics<parallel>], iteration_bounds = array<i64: 1>, scalar_prefetch = 0 : i64, scratch_operands = 0 : i64, tpu.core_type = #tpu.core_type<tc>, window_params = [{transform_indices = @transform_0, window_bounds = array<i64: 8, 256>}, {pipeline_mode = #tpu.pipeline_mode<synchronous>, transform_indices = @transform_1, window_bounds = array<i64: 256, 1>}, {transform_indices = @transform_2, window_bounds = array<i64: 1, 1>}, {transform_indices = @transform_3, window_bounds = array<i64: 8, 1>}]} {
    %c0 = arith.constant 0 : index
    %c0_0 = arith.constant 0 : index
    %0 = vector.load %arg1[%c0, %c0_0] : memref<8x256xf32, #tpu.memory_space<vmem>>, vector<8x256xf32>
    %c0_1 = arith.constant 0 : index
    %c0_2 = arith.constant 0 : index
    %1 = vector.load %arg2[%c0_1, %c0_2] : memref<256x1xf32, #tpu.memory_space<vmem>>, vector<256x1xf32>
    %cst = arith.constant dense<0.000000e+00> : vector<8x1xf32>
    %2 = tpu.matmul %0, %1, %cst {dimension_numbers = #tpu.dot_dimension_numbers<[1], [0], [0], [1], [0, 0, 1, 1], [], []>} : vector<8x256xf32>, vector<256x1xf32>, vector<8x1xf32> -> vector<8x1xf32>
    %c0_3 = arith.constant 0 : index
    %c0_4 = arith.constant 0 : index
    %3 = memref.load %arg3[%c0_3, %c0_4] : memref<1x1xf32, #tpu.memory_space<smem>>
    %4 = vector.broadcast %3 : f32 to vector<8x1xf32>
    %5 = arith.addf %2, %4 : vector<8x1xf32>
    %c0_5 = arith.constant 0 : index
    %c0_6 = arith.constant 0 : index
    %6 = vector.load %arg4[%c0_5, %c0_6] : memref<8x1xf32, #tpu.memory_space<vmem>>, vector<8x1xf32>
    tpu.vector_store %arg4[%c0_5, %c0_6], %5 {strides = array<i32>} : memref<8x1xf32, #tpu.memory_space<vmem>>, vector<8x1xf32>,
    return
  }
  func.func @transform_0(%arg0: i32) -> (i32, i32) {
    %c0_i32 = arith.constant 0 : i32
    %c0_i32_0 = arith.constant 0 : i32
    return %arg0, %c0_i32 : i32, i32
  }
  func.func @transform_1(%arg0: i32) -> (i32, i32) {
    %c0_i32 = arith.constant 0 : i32
    %c0_i32_0 = arith.constant 0 : i32
    %c0_i32_1 = arith.constant 0 : i32
    return %c0_i32, %c0_i32_0 : i32, i32
  }
  func.func @transform_2(%arg0: i32) -> (i32, i32) {
    %c0_i32 = arith.constant 0 : i32
    %c0_i32_0 = arith.constant 0 : i32
    %c0_i32_1 = arith.constant 0 : i32
    return %c0_i32, %c0_i32_0 : i32, i32
  }
  func.func @transform_3(%arg0: i32) -> (i32, i32) {
    %c0_i32 = arith.constant 0 : i32
    %c0_i32_0 = arith.constant 0 : i32
    return %arg0, %c0_i32 : i32, i32
  }
}

</mosaic_0001>

<bundles_post_ra>
// kernel: tpu_custom_call.1
= control target key start
LH: loop header
LB: loop body
LE: loop exit
PB: predicated region body
PF: predicated region fallthrough
CT: control target
= control target key end

     0   :  { %vm121_vm0 = vcmask 7168   ;;  %s322_s1 = inlined_call_operand.vmem [shape: f32[256,1], index: 1, kind: input, shape index: {}]   ;;  %s323_s0 = inlined_call_operand.vmem [shape: f32[8,256], index: 0, kind: input, shape index: {}]   ;;  %s324_s2 = inlined_call_operand.<no memory space> [shape: f32[1,1], index: 2, kind: input, shape index: {}]   ;;  %s325_s3 = inlined_call_operand.vmem [shape: f32[8,1], index: 3, kind: output, shape index: {}]  }
   0x1   :  { %v33_v0 = vld [vmem:[%s322_s1 + $0x80] sm:$0xff]  ;;  %v34_v1 = vld [vmem:[%s322_s1 + $0x88] sm:$0xff]  ;;  %v35_v5 = vld [vmem:[%s322_s1 + $0x90] sm:$0xff]  ;;  %v50_v51 = vstv %s324_s2 }
   0x2   :  { %v17_v2 = vld [vmem:[%s322_s1] sm:$0xff]  ;;  %v162_v3 = vpack.c.bf16 %v34_v1, %v33_v0  ;;  %v18_v4 = vld [vmem:[%s322_s1 + $0x8] sm:$0xff]  ;;  %v36_v6 = vld [vmem:[%s322_s1 + $0x98] sm:$0xff] }
   0x3   :  { %v164_v7 = vpack.c.bf16 %v18_v4, %v17_v2  ;;  %v166_v8 = vpack.c.bf16 %v36_v6, %v35_v5  ;;  %v19_v9 = vld [vmem:[%s322_s1 + $0x10] sm:$0xff]  ;;  %v20_v10 = vld [vmem:[%s322_s1 + $0x18] sm:$0xff]  ;;  %v37_v11 = vld [vmem:[%s322_s1 + $0xa0] sm:$0xff] }
   0x4   :  { %163 = vmatprep.subr.bf16.mxu0 %v162_v3  ;;  %v38_v12 = vld [vmem:[%s322_s1 + $0xa8] sm:$0xff]  ;;  %v168_v13 = vpack.c.bf16 %v20_v10, %v19_v9  ;;  %v21_v15 = vld [vmem:[%s322_s1 + $0x20] sm:$0xff]  ;;  %v39_v17 = vld [vmem:[%s322_s1 + $0xb0] sm:$0xff] }
   0x5   :  { %165 = vmatpush3.bf16.msra.mxu0 %v164_v7  ;;  %v170_v14 = vpack.c.bf16 %v38_v12, %v37_v11  ;;  %v22_v16 = vld [vmem:[%s322_s1 + $0x28] sm:$0xff]  ;;  %v40_v18 = vld [vmem:[%s322_s1 + $0xb8] sm:$0xff]  ;;  %v23_v21 = vld [vmem:[%s322_s1 + $0x30] sm:$0xff] }
   0x6   :  { %167 = vmatprep.subr.bf16.mxu0 %v166_v8  ;;  %v172_v19 = vpack.c.bf16 %v22_v16, %v21_v15  ;;  %v174_v20 = vpack.c.bf16 %v40_v18, %v39_v17  ;;  %v24_v22 = vld [vmem:[%s322_s1 + $0x38] sm:$0xff]  ;;  %v41_v23 = vld [vmem:[%s322_s1 + $0xc0] sm:$0xff]  ;;  %v42_v24 = vld [vmem:[%s322_s1 + $0xc8] sm:$0xff] }
   0x7   :  { %v16_v25 = vld [vmem:[%s323_s0 + $0x8] sm:$0xff]  ;;  %v176_v26 = vpack.c.bf16 %v24_v22, %v23_v21  ;;  %v178_v27 = vpack.c.bf16 %v42_v24, %v41_v23  ;;  %v25_v28 = vld [vmem:[%s322_s1 + $0x40] sm:$0xff]  ;;  %v43_v30 = vld [vmem:[%s322_s1 + $0xd0] sm:$0xff] }
   0x8   :  { %115 = vmatprep.mubr.f32.mxu0 %v16_v25  ;;  %v26_v29 = vld [vmem:[%s322_s1 + $0x48] sm:$0xff]  ;;  %v44_v31 = vld [vmem:[%s322_s1 + $0xd8] sm:$0xff]  ;;  %v27_v34 = vld [vmem:[%s322_s1 + $0x50] sm:$0xff] }
   0x9   :  { %169 = vmatpush3.bf16.msra.mxu0 %v168_v13  ;;  %v180_v32 = vpack.c.bf16 %v26_v29, %v25_v28  ;;  %v182_v33 = vpack.c.bf16 %v44_v31, %v43_v30  ;;  %v28_v35 = vld [vmem:[%s322_s1 + $0x58] sm:$0xff]  ;;  %v45_v36 = vld [vmem:[%s322_s1 + $0xe0] sm:$0xff]  ;;  %v46_v37 = vld [vmem:[%s322_s1 + $0xe8] sm:$0xff] }
   0xa   :  { %171 = vmatprep.subr.bf16.mxu0 %v170_v14  ;;  %v184_v38 = vpack.c.bf16 %v28_v35, %v27_v34  ;;  %v186_v39 = vpack.c.bf16 %v46_v37, %v45_v36  ;;  %v29_v40 = vld [vmem:[%s322_s1 + $0x60] sm:$0xff]  ;;  %v30_v41 = vld [vmem:[%s322_s1 + $0x68] sm:$0xff]  ;;  %v47_v42 = vld [vmem:[%s322_s1 + $0xf0] sm:$0xff] }
   0xb   :  { %v48_v43 = vld [vmem:[%s322_s1 + $0xf8] sm:$0xff]  ;;  %v188_v44 = vpack.c.bf16 %v30_v41, %v29_v40  ;;  %v31_v46 = vld [vmem:[%s322_s1 + $0x70] sm:$0xff]  ;;  %v15_v49 = vld [vmem:[%s323_s0] sm:$0xff] }
   0xc   :  { %v190_v45 = vpack.c.bf16 %v48_v43, %v47_v42  ;;  %v32_v47 = vld [vmem:[%s322_s1 + $0x78] sm:$0xff] }
   0xd   :  { %173 = vmatpush3.bf16.msra.mxu0 %v172_v19  ;;  %v192_v48 = vpack.c.bf16 %v32_v47, %v31_v46 }
   0xe   :  { %175 = vmatprep.subr.bf16.mxu0 %v174_v20 }
  0x11   :  { %177 = vmatpush3.bf16.msra.mxu0 %v176_v26 }
  0x12   :  { %179 = vmatprep.subr.bf16.mxu0 %v178_v27 }
  0x15   :  { %181 = vmatpush3.bf16.msra.mxu0 %v180_v32 }
  0x16   :  { %183 = vmatprep.subr.bf16.mxu0 %v182_v33 }
  0x19   :  { %185 = vmatpush3.bf16.msra.mxu0 %v184_v38 }
  0x1a   :  { %187 = vmatprep.subr.bf16.mxu0 %v186_v39 }
  0x1d   :  { %189 = vmatpush3.bf16.msra.mxu0 %v188_v44 }
  0x1e   :  { %191 = vmatprep.subr.bf16.mxu0 %v190_v45 }
  0x21   :  { %193 = vmatpush3.bf16.msra.mxu0 %v192_v48 }
  0x24   :  { %116 = vmatmul.mubr.f32.vlgmr.msra.gmra.mrb[0].mxu0 %v15_v49 }
  0xf7   :  { %v159_v50 = vpop.f32.mrb[0].mxu0 }
  0xf8   :  { %v160_v52 = vpop.f32.mrb[1].mxu0 }
  0xf9   :  { %v161_v53 = vadd.f32 %v160_v52, %v159_v50 }
  0xfb   :  { %v118_v54 = vadd.f32 %v161_v53, %v50_v51 }
  0xfd   :  { %122 = vst.msk [vmem:[%s325_s3] sm:$0xff] %vm121_vm0, %v118_v54 }

</bundles_post_ra>
